<compile_context>
chip_gen: v5e
topology: v5e:2x2
jax: 0.10.0
libtpu: 0.0.40
codegen_flags: <defaults>
</compile_context>

<pallas_src>
import jax
import jax.numpy as jnp
from jax import lax
from jax.experimental import pallas as pl
from jax.experimental.pallas import tpu as pltpu

_VMEM_LIMIT = 32 * 1024 * 1024  # explicit scoped-VMEM budget (safe on v5e/v6e/v7x)


# ----------------------------------------------------------------------------
# Kernel 1: utterance embedding surrogate (masked mean pool + projection E->H)
# ----------------------------------------------------------------------------
def _embed_kernel(emb_ref, mask_ref, wp_ref, bp_ref, out_ref):
    emb = emb_ref[...]                                   # (tN, T, E) f32
    mask = mask_ref[...]                                 # (tN, T)    f32
    masked = emb * mask[:, :, None]
    denom = jnp.maximum(jnp.sum(mask, axis=1, keepdims=True), 1.0)
    pooled = jnp.sum(masked, axis=1) / denom             # (tN, E)
    out_ref[...] = (
        jnp.dot(pooled, wp_ref[...], preferred_element_type=jnp.float32)
        + bp_ref[...]                                    # (1, H) broadcast
    )


def dialogue_embed(embeddings, input_mask, w_proj, b_proj, *, tile_n):
    N, T, E = embeddings.shape
    H = w_proj.shape[1]
    grid = (N // tile_n,)
    return pl.pallas_call(
        _embed_kernel,
        out_shape=jax.ShapeDtypeStruct((N, H), jnp.float32),
        grid=grid,
        in_specs=[
            pl.BlockSpec((tile_n, T, E), lambda i: (i, 0, 0)),
            pl.BlockSpec((tile_n, T), lambda i: (i, 0)),
            pl.BlockSpec((E, H), lambda i: (0, 0)),
            pl.BlockSpec((1, H), lambda i: (0, 0)),
        ],
        out_specs=pl.BlockSpec((tile_n, H), lambda i: (i, 0)),
        compiler_params=pltpu.CompilerParams(
            dimension_semantics=("parallel",),         # independent over N tiles
            vmem_limit_bytes=_VMEM_LIMIT),
    )(embeddings, input_mask, w_proj, b_proj.reshape(1, H))


# ----------------------------------------------------------------------------
# Kernel 2: fused bilinear next/prev scorers + log_softmax + loss + predictions
# ----------------------------------------------------------------------------
def _classifier_kernel(enc_t_ref, enc_all_ref, wcat_ref, bias_ref,
                       opt_ref, gn_ref, gp_ref, cm_ref,
                       loss_ref, nextp_ref, prevp_ref,
                       num_acc, den_acc):
    step = pl.program_id(0)

    @pl.when(step == 0)
    def _():
        num_acc[...] = jnp.zeros_like(num_acc)
        den_acc[...] = jnp.zeros_like(den_acc)

    enc_t = enc_t_ref[...]                               # (tN, H)   rows tile
    enc_all = enc_all_ref[...]                           # (N, H)    all rows
    tN, H = enc_t.shape
    Nfull = enc_all.shape[0]
    opts = opt_ref[...]                                  # (tN, O) int32
    O = opts.shape[1]

    # Fused bilinear heads: one MXU matmul against [W_next | W_prev] (H, 2H).
    v = jnp.dot(enc_t, wcat_ref[...],
                preferred_element_type=jnp.float32)      # (tN, 2H)
    v_next = v[:, :H]
    v_prev = v[:, H:]

    # Score matrices against ALL encoded utterances (MXU), contract over H.
    dims = (((1,), (1,)), ((), ()))
    s_next = lax.dot_general(v_next, enc_all, dims,
                             preferred_element_type=jnp.float32)   # (tN, N)
    s_prev = lax.dot_general(v_prev, enc_all, dims,
                             preferred_element_type=jnp.float32)   # (tN, N)

    # Gather S[n, options[n, o]] with a per-row one-hot over the lane axis N.
    col_n = lax.broadcasted_iota(jnp.int32, (tN, Nfull), 1)
    onehot = (col_n[:, None, :] == opts[:, :, None]).astype(jnp.float32)
    b_next = bias_ref[0]                                 # SMEM scalar reads
    b_prev = bias_ref[1]
    next_logits = jnp.sum(s_next[:, None, :] * onehot, axis=-1) + b_next  # (tN, O)
    prev_logits = jnp.sum(s_prev[:, None, :] * onehot, axis=-1) + b_prev  # (tN, O)

    def log_softmax(x):                                  # over options axis
        m = jnp.max(x, axis=-1, keepdims=True)
        s = x - m
        return s - jnp.log(jnp.sum(jnp.exp(s), axis=-1, keepdims=True))

    next_lp = log_softmax(next_logits)
    prev_lp = log_softmax(prev_logits)

    # Gold log-prob gather via one-hot over the options axis.
    col_o = lax.broadcasted_iota(jnp.int32, (tN, O), 1)
    oh_gn = (col_o == gn_ref[...]).astype(jnp.float32)   # gn: (tN, 1)
    oh_gp = (col_o == gp_ref[...]).astype(jnp.float32)
    losses = (-jnp.sum(next_lp * oh_gn, axis=-1, keepdims=True)
              - jnp.sum(prev_lp * oh_gp, axis=-1, keepdims=True))  # (tN, 1)

    cm = cm_ref[...]                                     # (tN, 1)
    num_acc[...] += jnp.sum(losses * cm).reshape(1, 1)
    den_acc[...] += jnp.sum(cm).reshape(1, 1)

    def argmax_first(x):
        # first index of the maximum == torch.sort(descending)[1][:, 0]
        m = jnp.max(x, axis=-1, keepdims=True)
        idx = jnp.where(x == m, col_o, jnp.int32(O))
        return jnp.min(idx, axis=-1, keepdims=True)      # (tN, 1) i32

    nextp_ref[...] = argmax_first(next_logits)
    prevp_ref[...] = argmax_first(prev_logits)

    @pl.when(step == pl.num_programs(0) - 1)
    def _():
        # Matches torch exactly: loss = sum(losses*mask) / (2 * sum(mask)).
        loss_ref[...] = num_acc[...] / (2.0 * den_acc[...])


def dialogue_classifier_forward(embeddings, input_mask, conversation_mask,
                                max_num_utterances, options_tensor,
                                gold_next, gold_prev, params, *, tile_n=8):
    del max_num_utterances  # implied by shapes
    N = embeddings.shape[0]
    O = options_tensor.shape[1]
    H = params["w_proj"].shape[1]

    if N % tile_n != 0:
        tile_n = N  # TODO(synk): pad N for ragged batches instead of one big tile

    # DialogueEmbedder (surrogate) -> encoded utterances (N, H), tiled over N.
    encoded = dialogue_embed(embeddings, input_mask,
                             params["w_proj"], params["b_proj"], tile_n=tile_n)

    # Fuse the two bilinear heads into a single (H, 2H) weight; biases -> SMEM.
    w_cat = jnp.concatenate([params["w_next"], params["w_prev"]], axis=1)
    biases = jnp.concatenate([params["b_next"],
                              params["b_prev"]]).astype(jnp.float32)  # (2,)

    cm = conversation_mask.reshape(N, 1).astype(jnp.float32)
    gn = gold_next.reshape(N, 1).astype(jnp.int32)
    gp = gold_prev.reshape(N, 1).astype(jnp.int32)

    grid = (N // tile_n,)
    loss, next_pred, prev_pred = pl.pallas_call(
        _classifier_kernel,
        out_shape=(jax.ShapeDtypeStruct((1, 1), jnp.float32),
                   jax.ShapeDtypeStruct((N, 1), jnp.int32),
                   jax.ShapeDtypeStruct((N, 1), jnp.int32)),
        grid=grid,
        in_specs=[
            pl.BlockSpec((tile_n, H), lambda i: (i, 0)),        # enc rows (tiled)
            pl.BlockSpec((N, H), lambda i: (0, 0)),             # enc full (resident)
            pl.BlockSpec((H, 2 * H), lambda i: (0, 0)),         # fused bilinear W
            pl.BlockSpec(memory_space=pltpu.MemorySpace.SMEM),  # biases (2,)
            pl.BlockSpec((tile_n, O), lambda i: (i, 0)),        # option ids
            pl.BlockSpec((tile_n, 1), lambda i: (i, 0)),        # gold next
            pl.BlockSpec((tile_n, 1), lambda i: (i, 0)),        # gold prev
            pl.BlockSpec((tile_n, 1), lambda i: (i, 0)),        # conversation mask
        ],
        out_specs=(pl.BlockSpec((1, 1), lambda i: (0, 0)),      # loss (accumulated)
                   pl.BlockSpec((tile_n, 1), lambda i: (i, 0)),
                   pl.BlockSpec((tile_n, 1), lambda i: (i, 0))),
        scratch_shapes=[pltpu.VMEM((1, 1), jnp.float32),        # loss numerator
                        pltpu.VMEM((1, 1), jnp.float32)],       # mask denominator
        compiler_params=pltpu.CompilerParams(
            dimension_semantics=("arbitrary",),  # loss reduction over the N axis
            vmem_limit_bytes=_VMEM_LIMIT),
    )(encoded, encoded, w_cat, biases,
      options_tensor.astype(jnp.int32), gn, gp, cm)

    return loss[0, 0], (next_pred[:, 0], prev_pred[:, 0])


# ----------------------------------------------------------------------------
# Pure-JAX reference (for a quick correctness check)
# ----------------------------------------------------------------------------
def reference_forward(embeddings, input_mask, conversation_mask,
                      options_tensor, gold_next, gold_prev, params):
    masked = embeddings * input_mask[:, :, None]
    pooled = masked.sum(1) / jnp.maximum(input_mask.sum(1, keepdims=True), 1.0)
    enc = pooled @ params["w_proj"] + params["b_proj"]
    N, H = enc.shape
    O = options_tensor.shape[1]
    opts = enc[options_tensor.reshape(-1)].reshape(N, O, H)

    def bil(w, b):
        return jnp.einsum("nh,hk,nok->no", enc, w, opts) + b

    nl = bil(params["w_next"], params["b_next"])
    pg = bil(params["w_prev"], params["b_prev"])
    nlp = jax.nn.log_softmax(nl, axis=-1)
    plp = jax.nn.log_softmax(pg, axis=-1)
    losses = (-jnp.take_along_axis(nlp, gold_next[:, None], axis=1)
              - jnp.take_along_axis(plp, gold_prev[:, None], axis=1))
    cm = conversation_mask.reshape(N, 1).astype(jnp.float32)
    loss = jnp.sum(losses * cm) / (2.0 * jnp.sum(cm))
    return loss, jnp.argmax(nl, -1), jnp.argmax(pg, -1)


# ----------------------------------------------------------------------------
if __name__ == "__main__":
    key = jax.random.PRNGKey(0)
    B, U = 2, 8                      # conversations x max utterances per conv
    N = B * U                        # total utterances
    T, E = 8, 128                    # tokens per utterance, token-embedding dim
    enc_hidden = 64                  # encoder_hidden_size
    H = 2 * enc_hidden               # 'bilstm' encoding -> 2 * hidden = 128
    O = 8                            # candidate options per utterance
    TILE_N = 8                       # utterance-axis tile -> grid of 2 steps

    ks = jax.random.split(key, 10)
    embeddings = jax.random.normal(ks[0], (N, T, E), jnp.float32)
    input_mask = (jax.random.uniform(ks[1], (N, T)) > 0.2).astype(jnp.float32)
    input_mask = input_mask.at[:, 0].set(1.0)          # at least one token
    conversation_mask = jnp.array([[1, 1, 1, 1, 1, 1, 0, 0],
                                   [1, 1, 1, 1, 0, 0, 0, 0]], jnp.float32)
    options_tensor = jax.random.randint(ks[2], (N, O), 0, N, jnp.int32)
    gold_next = jax.random.randint(ks[3], (N,), 0, O, jnp.int32)
    gold_prev = jax.random.randint(ks[4], (N,), 0, O, jnp.int32)

    params = {
        "w_proj": 0.05 * jax.random.normal(ks[5], (E, H), jnp.float32),
        "b_proj": 0.01 * jnp.arange(H, dtype=jnp.float32),
        "w_next": 0.05 * jax.random.normal(ks[6], (H, H), jnp.float32),
        "b_next": jnp.array([0.05], jnp.float32),
        "w_prev": 0.05 * jax.random.normal(ks[7], (H, H), jnp.float32),
        "b_prev": jnp.array([-0.03], jnp.float32),
    }

    loss, (next_pred, prev_pred) = dialogue_classifier_forward(
        embeddings, input_mask, conversation_mask, U,
        options_tensor, gold_next, gold_prev, params, tile_n=TILE_N)
    jax.block_until_ready((loss, next_pred, prev_pred))

    ref_loss, ref_next, ref_prev = reference_forward(
        embeddings, input_mask, conversation_mask,
        options_tensor, gold_next, gold_prev, params)

    assert jnp.allclose(loss, ref_loss, rtol=1e-4, atol=1e-4), (loss, ref_loss)
    assert jnp.array_equal(next_pred, ref_next.astype(jnp.int32))
    assert jnp.array_equal(prev_pred, ref_prev.astype(jnp.int32))

    print("KERNEL_OK")
</pallas_src>

<mosaic_0001>
module attributes {stable_mosaic.version = 11 : i64} {
  func.func @_embed_kernel(%arg0: i32, %arg1: memref<8x8x128xf32, #tpu.memory_space<vmem>>, %arg2: memref<8x8xf32, #tpu.memory_space<vmem>>, %arg3: memref<128x128xf32, #tpu.memory_space<vmem>>, %arg4: memref<1x128xf32, #tpu.memory_space<vmem>>, %arg5: memref<8x128xf32, #tpu.memory_space<vmem>>) attributes {dimension_semantics = [#tpu.dimension_semantics<parallel>], iteration_bounds = array<i64: 2>, scalar_prefetch = 0 : i64, scratch_operands = 0 : i64, tpu.core_type = #tpu.core_type<tc>, window_params = [{transform_indices = @transform_0, window_bounds = array<i64: 8, 8, 128>}, {transform_indices = @transform_1, window_bounds = array<i64: 8, 8>}, {pipeline_mode = #tpu.pipeline_mode<synchronous>, transform_indices = @transform_2, window_bounds = array<i64: 128, 128>}, {pipeline_mode = #tpu.pipeline_mode<synchronous>, transform_indices = @transform_3, window_bounds = array<i64: 1, 128>}, {transform_indices = @transform_4, window_bounds = array<i64: 8, 128>}]} {
    %c0 = arith.constant 0 : index
    %c0_0 = arith.constant 0 : index
    %c0_1 = arith.constant 0 : index
    %0 = vector.load %arg1[%c0, %c0_0, %c0_1] : memref<8x8x128xf32, #tpu.memory_space<vmem>>, vector<8x8x128xf32>
    %c0_2 = arith.constant 0 : index
    %c0_3 = arith.constant 0 : index
    %1 = vector.load %arg2[%c0_2, %c0_3] : memref<8x8xf32, #tpu.memory_space<vmem>>, vector<8x8xf32>
    %2 = vector.shape_cast %1 : vector<8x8xf32> to vector<8x8x1xf32>
    %3 = vector.broadcast %2 : vector<8x8x1xf32> to vector<8x8x128xf32>
    %4 = arith.mulf %0, %3 : vector<8x8x128xf32>
    %cst = arith.constant dense<0.000000e+00> : vector<8xf32>
    %5 = vector.multi_reduction <add>, %1, %cst [1] : vector<8x8xf32> to vector<8xf32>
    %6 = vector.shape_cast %5 : vector<8xf32> to vector<8x1xf32>
    %cst_4 = arith.constant 1.000000e+00 : f32
    %7 = vector.broadcast %cst_4 : f32 to vector<8x1xf32>
    %8 = arith.maximumf %6, %7 : vector<8x1xf32>
    %cst_5 = arith.constant dense<0.000000e+00> : vector<8x128xf32>
    %9 = vector.multi_reduction <add>, %4, %cst_5 [1] : vector<8x8x128xf32> to vector<8x128xf32>
    %10 = vector.broadcast %8 : vector<8x1xf32> to vector<8x128xf32>
    %11 = arith.divf %9, %10 : vector<8x128xf32>
    %c0_6 = arith.constant 0 : index
    %c0_7 = arith.constant 0 : index
    %12 = vector.load %arg3[%c0_6, %c0_7] : memref<128x128xf32, #tpu.memory_space<vmem>>, vector<128x128xf32>
    %cst_8 = arith.constant dense<0.000000e+00> : vector<8x128xf32>
    %13 = tpu.matmul %11, %12, %cst_8 {dimension_numbers = #tpu.dot_dimension_numbers<[1], [0], [0], [1], [0, 0, 1, 1], [], []>} : vector<8x128xf32>, vector<128x128xf32>, vector<8x128xf32> -> vector<8x128xf32>
    %c0_9 = arith.constant 0 : index
    %c0_10 = arith.constant 0 : index
    %14 = vector.load %arg4[%c0_9, %c0_10] : memref<1x128xf32, #tpu.memory_space<vmem>>, vector<1x128xf32>
    %15 = vector.broadcast %14 : vector<1x128xf32> to vector<8x128xf32>
    %16 = arith.addf %13, %15 : vector<8x128xf32>
    %c0_11 = arith.constant 0 : index
    %c0_12 = arith.constant 0 : index
    %17 = vector.load %arg5[%c0_11, %c0_12] : memref<8x128xf32, #tpu.memory_space<vmem>>, vector<8x128xf32>
    tpu.vector_store %arg5[%c0_11, %c0_12], %16 {strides = array<i32>} : memref<8x128xf32, #tpu.memory_space<vmem>>, vector<8x128xf32>,
    return
  }
  func.func @transform_0(%arg0: i32) -> (i32, i32, i32) {
    %c0_i32 = arith.constant 0 : i32
    %c0_i32_0 = arith.constant 0 : i32
    %c0_i32_1 = arith.constant 0 : i32
    return %arg0, %c0_i32, %c0_i32_0 : i32, i32, i32
  }
  func.func @transform_1(%arg0: i32) -> (i32, i32) {
    %c0_i32 = arith.constant 0 : i32
    %c0_i32_0 = arith.constant 0 : i32
    return %arg0, %c0_i32 : i32, i32
  }
  func.func @transform_2(%arg0: i32) -> (i32, i32) {
    %c0_i32 = arith.constant 0 : i32
    %c0_i32_0 = arith.constant 0 : i32
    %c0_i32_1 = arith.constant 0 : i32
    return %c0_i32, %c0_i32_0 : i32, i32
  }
  func.func @transform_3(%arg0: i32) -> (i32, i32) {
    %c0_i32 = arith.constant 0 : i32
    %c0_i32_0 = arith.constant 0 : i32
    %c0_i32_1 = arith.constant 0 : i32
    return %c0_i32, %c0_i32_0 : i32, i32
  }
  func.func @transform_4(%arg0: i32) -> (i32, i32) {
    %c0_i32 = arith.constant 0 : i32
    %c0_i32_0 = arith.constant 0 : i32
    return %arg0, %c0_i32 : i32, i32
  }
}

</mosaic_0001>

<bundles_post_ra>
// kernel: tpu_custom_call.1
= control target key start
LH: loop header
LB: loop body
LE: loop exit
PB: predicated region body
PF: predicated region fallthrough
CT: control target
= control target key end

     0   :  { %9 = vsyncpa [#allocation3], 0  ;;  %s1314_s0 = inlined_call_operand.hbm [shape: f32[16,8,128], index: 0, kind: input, shape index: {}]   ;;  %s1315_s1 = inlined_call_operand.vmem [shape: f32[16,8], index: 1, kind: input, shape index: {}]   ;;  %s1316_s2 = inlined_call_operand.hbm [shape: f32[128,128], index: 2, kind: input, shape index: {}]   ;;  %s1317_s3 = inlined_call_operand.vmem [shape: f32[1,128], index: 3, kind: input, shape index: {}]   ;;  %s1318_s4 = inlined_call_operand.hbm [shape: f32[16,128], index: 4, kind: output, shape index: {}]  }
   0x1   :  { %11 = vsyncpa [#allocation3 + $0x1], 0 }
   0x2   :  { %12 = vsyncpa [#allocation6], 0 }
   0x3   :  { %13 = vsyncpa [#allocation4], 0 }
   0x4   :  { %15 = vsyncpa [#allocation4 + $0x1], 0  ;;  %s950_s15 = smov 0   ;;  %s952_s16 = smov 0  }
   0x5   :  { %s954_s17 = smov 0   ;;  %s956_s18 = smov 0  }
   0x6 LB: > { %s971_s19 = sadd.s32 4294967295, %s920_s18   ;;  %s694_s20 = sadd.s32 4294967294, %s920_s18   ;;  %s920_s18 = sphi %s956_s18, %s1350_s18   ;;  %s916_s17 = sphi %s954_s17, %s1349_s17   ;;  %s912_s16 = sphi %s952_s16, %s1348_s16   ;;  %s908_s15 = sphi %s950_s15, %s1347_s15  }
   0x7   : > { %p41_p0 = scmp.ne.s32.totalorder %s912_s16, %s908_s15  ;;  %p42_p1 = scmp.eq.s32.totalorder %s971_s19, 0 }
   0x8   : > { %p133_p2 = scmp.eq.s32.totalorder %s971_s19, 1  ;;  %p139_p3 = scmp.eq.s32.totalorder %s694_s20, 1 }
   0x9   : > { %p980_p4 = por %p42_p1, %p41_p0  ;;  %p695_p5 = scmp.ge.s32.totalorder %s920_s18, 1 }
   0xa   : > { %p985_p6 = por %p139_p3, %p41_p0  ;;  %p146_p7 = scmp.lt.s32.totalorder %s920_s18, 3 }
   0xb   : > { %s157_s25 = sshll.u32 %s1316_s2, 4  ;;  %s922_s27 = smov [#allocation5]   ;;  %s158_s25 = int_to_ptr.hbm [resolvable:$true] %s157_s25 }
   0xc   : > { %p993_p8 = pnand %p695_p5, %p146_p7  ;;  %s159_s28 = sshll.u32 %s922_s27, 4  ;;  %s160_s28 = int_to_ptr.vmem [resolvable:$true] %s159_s28 }
   0xd   : > { %s1003_s29 = sadd.s32 1, %s920_s18   ;;  %s923_s30 = smov 128  }
   0xe   : > { %p719_p9 = pneg %p993_p8  ;;  %s924_s5 = smov 8  }
   0xf   : > { %s25_s6 = ssub.s32 %s920_s18, %s1003_s29  ;;  %s28_s7 = sadd.s32 1, %s916_s17 }
  0x10   : > { %p720_p10 = pnand %p719_p9, %p42_p1  ;;  %p26_p12 = scmp.eq.s32.totalorder %s25_s6, 0 }
  0x11   : > { %p35_p13 = scmp.ne.s32.totalorder %s916_s17, %s912_s16  ;;  %p36_p0 = scmp.eq.s32.totalorder %s920_s18, 0 }
  0x12   : > { %722 = dma.hbm_to_vmem [thread:$0]  (!%p720_p10), %s158_s25, 2048, %s160_s28, [#allocation6], %s923_s30, %s923_s30, %s924_s5  }
  0x13   : > { %s1015_s8 = scalar_select %p26_p12, %s916_s17, %s28_s7  }
  0x14   : > { %p1019_p3 = por %p133_p2, %p35_p13  ;;  %p732_p5 = scmp.lt.s32.totalorder %s920_s18, 2 }
  0x15   : > { %s176_s10 = sand.u32 1, %s916_s17   ;;  %s710_s11 = sshll.u32 %s920_s18, 6 }
  0x16   : > { %p37_p7 = por %p36_p0, %p35_p13  ;;  %s698_s12 = sshll.u32 %s176_s10, 6 }
  0x17   : > { %s185_s20 = scalar_lea.hbm %s1314_s0, %s710_s11  ;;  %s180_s24 = scalar_lea.vmem [#allocation2], %s698_s12 }
  0x18   : > { %s186_s23 = sshll.u32 %s185_s20, 4  ;;  %s188_s25 = sshll.u32 %s180_s24, 4  ;;  %s187_s23 = int_to_ptr.hbm [resolvable:$true] %s186_s23  ;;  %s189_s25 = int_to_ptr.vmem [resolvable:$true] %s188_s25 }
  0x19   : > { %p1029_p9 = pnand %p732_p5, %p37_p7  ;;  %s177_s28 = scalar_lea.sflag [#allocation3], %s176_s10 }
  0x1a   : > { %s820_s6 = sshra.s32 %s187_s23, 4  ;;  %s827_s12 = scalar_lea.hbm %s1314_s0, 128  ;;  %s821_s6 = int_to_ptr.hbm [resolvable:$true] %s820_s6 }
  0x1b   : > { %s822_s7 = scalar_lea.hbm %s821_s6, 64  ;;  %p824_p10 = pneg %p1029_p9 }
  0x1c   : > { %p823_p2 = scmp.ne.s32.totalorder %s821_s6, %s822_s7  ;;  %p828_p0 = scmp.lt.s32.totalorder %s821_s6, %s1314_s0 }
  0x1d   : > { %p829_p5 = scmp.lt.s32.totalorder %s827_s12, %s822_s7 }
  0x1e   : > { %p825_p12 = pnand %p824_p10, %p823_p2 }
  0x1f   : > { %p830_p7 = por %p829_p5, %p828_p0 }
  0x20   : > { %p826_p13 = pneg %p825_p12 }
  0x22   : > { %p831_p11 = pnand %p830_p7, %p826_p13 }
  0x24   : > { %834 = shalt.err (!%p831_p11)
}
  0x25   : > { %726 = dma.hbm_to_vmem [thread:$0]  (!%p1029_p9), %s187_s23, 1024, %s189_s25, %s177_s28, %s923_s30, %s923_s30, %s924_s5  }
  0x26   : > { %207 = sbr.rel (%p993_p8) target bundleno = 352 (0x160), region = 36  ;;  %s1049_s10 = sand.u32 (!%p993_p8), 1, %s912_s16  }
  0x27   : > { %s702_s24 = sshll.u32 (!%p993_p8), %s1049_s10, 6  ;;  %s210_s6 = scalar_lea.sflag (!%p993_p8), [#allocation3], %s1049_s10 }
  0x28   : > { %s1053_s7 = scalar_lea.vmem (!%p993_p8), [#allocation2], %s702_s24 }
  0x2b   : > { %895 = dma.done.wait (%p980_p4), %s210_s6, 1024  }
  0x2c   : > { %897 = vsyncadd (%p980_p4), %s210_s6, 4294966272 }
  0x2d   : > { %899 = dma.done.wait (%p42_p1), [#allocation6], 2048  }
  0x2e   : > { %901 = vsyncadd (%p42_p1), [#allocation6], 4294965248  ;;  %v263_v0 = vlaneseq  ;;  %p249_p8 = scmp.lt.s32.totalorder %s971_s19, 1  ;;  %vm326_vm0 = vcmask 64512   ;;  %v256_v13 = vld [vmem:[%s1053_s7 + $0x18] sm:$0xff]  ;;  %v257_v15 = vld [vmem:[%s1053_s7 + $0x20] sm:$0xff] }
  0x2f   : > { %v530_v14 = vld [vmem:[#allocation5 + $0x78] sm:$0xff]  ;;  %v529_v17 = vld [vmem:[#allocation5 + $0x70] sm:$0xff]  ;;  %v528_v22 = vld [vmem:[#allocation5 + $0x68] sm:$0xff]  ;;  %s704_s25 = sshll.u32 %s1049_s10, 3  ;;  %s707_s27 = sshll.u32 %s971_s19, 3 }
  0x30   : > { %v264_v1 = vshrl.u32 %v263_v0, 7  ;;  %s250_s26 = scalar_select %p249_p8, %s971_s19, 1  ;;  %565 = vmatpush.msra.mxu0 %v530_v14  ;;  %v259_v23 = vld [vmem:[%s1053_s7 + $0x30] sm:$0xff]  ;;  %v527_v28 = vld [vmem:[#allocation5 + $0x60] sm:$0xff]  ;;  %v526_v32 = vld [vmem:[#allocation5 + $0x58] sm:$0xff] }
  0x31   : > { %v525_v34 = vld [vmem:[#allocation5 + $0x50] sm:$0xff]  ;;  %v524_v40 = vld [vmem:[#allocation5 + $0x48] sm:$0xff]  ;;  %v523_v45 = vld [vmem:[#allocation5 + $0x40] sm:$0xff]  ;;  %s597_s13 = scalar_lea.hbm %s1318_s4, %s707_s27  ;;  %s247_s20 = scalar_lea.vmem [#allocation7], %s704_s25 }
  0x32   : > { %771 = vset.pattern.permute.xlu1 %v264_v1  ;;  %s705_s30 = sshll.u32 %s250_s26, 3  ;;  %772 = vset.pattern.permute.xlu2 %v264_v1  ;;  %v255_v36 = vld [vmem:[%s1053_s7 + $0x10] sm:$0xff]  ;;  %v522_v49 = vld [vmem:[#allocation5 + $0x38] sm:$0xff]  ;;  %v520_v53 = vld [vmem:[#allocation5 + $0x28] sm:$0xff]  ;;  %s599_s24 = sshll.u32 %s247_s20, 4  ;;  %s600_s24 = int_to_ptr.vmem [resolvable:$true] %s599_s24 }
  0x33   : > { %s252_s21 = scalar_lea.vmem %s1315_s1, %s705_s30  ;;  %770 = vset.pattern.permute.xlu0 %v264_v1  ;;  %566 = vmatpush.msra.mxu0 %v529_v17  ;;  %v521_v52 = vld [vmem:[#allocation5 + $0x30] sm:$0xff]  ;;  %v253_v56 = vld [vmem:[%s1053_s7] sm:$0xff]  ;;  %s601_s6 = sshll.u32 %s597_s13, 4  ;;  %s602_s6 = int_to_ptr.hbm [resolvable:$true] %s601_s6 }
  0x34   : > { %v261_v2 = vld [vmem:[%s252_s21] sm:$0xff]  ;;  %s864_s26 = sshra.s32 %s602_s6, 4  ;;  %s870_s23 = scalar_lea.hbm %s1318_s4, 16  ;;  %s865_s26 = int_to_ptr.hbm [resolvable:$true] %s864_s26 }
  0x35   : > { %v327_v3 = vsel %vm326_vm0, %v261_v2, 0.0  ;;  %v276_v4 = vperm.slane %v261_v2, 2  ;;  %v283_v5 = vperm.slane %v261_v2, 3  ;;  %v262_v6 = vperm.slane %v261_v2, 0  ;;  %567 = vmatpush.msra.mxu0 %v528_v22  ;;  %v519_v62 = vld [vmem:[#allocation5 + $0x20] sm:$0xff]  ;;  %s866_s19 = scalar_lea.hbm %s865_s26, 8  ;;  %p871_p9 = scmp.lt.s32.totalorder %s865_s26, %s1318_s4 }
  0x36   : > { %328 = vadd.xlane.f32.xlu0 %v327_v3  ;;  %v290_v7 = vperm.slane %v261_v2, 4  ;;  %v297_v8 = vperm.slane %v261_v2, 5  ;;  %v304_v9 = vperm.slane %v261_v2, 6  ;;  %v269_v10 = vperm.slane %v261_v2, 1  ;;  %p867_p1 = scmp.ne.s32.totalorder %s865_s26, %s866_s19  ;;  %p872_p2 = scmp.lt.s32.totalorder %s870_s23, %s866_s19 }
  0x37   : > { %v311_v11 = vperm.slane %v261_v2, 7  ;;  %568 = vmatpush.msra.mxu0 %v527_v28 }
  0x38   : > { %p868_p4 = pnand %p867_p1, %p1019_p3  ;;  %p873_p10 = por %p872_p2, %p871_p9 }
  0x39   : > { %569 = vmatpush.msra.mxu0 %v526_v32 }
  0x3a   : > { %281 = vperm.xlu1 %771, %v276_v4   ;;  %288 = vperm.xlu2 %772, %v283_v5   ;;  %p869_p11 = pneg %p868_p4 }
  0x3b   : > { %570 = vmatpush.msra.mxu0 %v525_v34 }
  0x3c   : > { %p874_p12 = pnand %p873_p10, %p869_p11 }
  0x3d   : > { %571 = vmatpush.msra.mxu0 %v524_v40 }
  0x3f   : > { %572 = vmatpush.msra.mxu0 %v523_v45 }
  0x41   : > { %573 = vmatpush.msra.mxu0 %v522_v49 }
  0x42   : > { %267 = vperm.xlu1 %771, %v262_v6   ;;  %295 = vperm.xlu2 %772, %v290_v7   ;;  %v518_v7 = vld [vmem:[#allocation5 + $0x18] sm:$0xff] }
  0x43   : > { %574 = vmatpush.msra.mxu0 %v521_v52 }
  0x45   : > { %575 = vmatpush.msra.mxu0 %v520_v53 }
  0x47   : > { %576 = vmatpush.msra.mxu0 %v519_v62 }
  0x49   : > { %577 = vmatpush.msra.mxu0 %v518_v7 }
  0x4a   : > { %302 = vperm.xlu1 %771, %v297_v8   ;;  %309 = vperm.xlu2 %772, %v304_v9  }
  0x4b   : > { %274 = vperm.xlu0 %770, %v269_v10  }
  0x52   : > { %316 = vperm.xlu1 %771, %v311_v11  }
  0x94   : > { %v289_v12 = vpop.permute.xlu2 %288 }
  0x95   : > { %v321_v16 = vmul.f32 %v289_v12, %v256_v13 }
  0x97   : > { %v349_v20 = vrot.slane %v321_v16, 4 }
  0x99   : > { %v350_v24 = vadd.f32 %v349_v20, %v321_v16  ;;  %v517_v16 = vld [vmem:[#allocation5 + $0x10] sm:$0xff] }
  0x9a   : > { %578 = vmatpush.msra.mxu0 %v517_v16 }
  0x9b   : > { %v351_v29 = vrot.slane %v350_v24, 2 }
  0x9c   : > { %v296_v18 = vpop.permute.xlu2 %295 }
  0x9d   : > { %v322_v19 = vmul.f32 %v296_v18, %v257_v15  ;;  %v352_v37 = vadd.f32 %v351_v29, %v350_v24 }
  0x9f   : > { %v355_v21 = vrot.slane %v322_v19, 4  ;;  %v353_v47 = vrot.slane %v352_v37, 1 }
  0xa1   : > { %v356_v25 = vadd.f32 %v355_v21, %v322_v19  ;;  %v1087_v58 = vadd.f32 %v353_v47, %v352_v37  ;;  %v515_v37 = vld [vmem:[#allocation5] sm:$0xff] }
  0xa3   : > { %v357_v30 = vrot.slane %v356_v25, 2 }
  0xa4   : > { %v310_v26 = vpop.permute.xlu2 %309 }
  0xa5   : > { %v324_v27 = vmul.f32 %v310_v26, %v259_v23  ;;  %v358_v38 = vadd.f32 %v357_v30, %v356_v25  ;;  %v516_v25 = vld [vmem:[#allocation5 + $0x8] sm:$0xff] }
  0xa6   : > { %579 = vmatpush.msra.mxu0 %v516_v25 }
  0xa7   : > { %v367_v31 = vrot.slane %v324_v27, 4  ;;  %v359_v48 = vrot.slane %v358_v38, 1 }
  0xa8   : > { %580 = vmatpush.msra.mxu0 %v515_v37 }
  0xa9   : > { %v368_v33 = vadd.f32 %v367_v31, %v324_v27  ;;  %v329_v35 = vpop.xlane.xlu0 %328  ;;  %v1089_v59 = vadd.f32 %v359_v48, %v358_v38  ;;  %v258_v31 = vld [vmem:[%s1053_s7 + $0x28] sm:$0xff] }
  0xaa   : > { %v1072_v39 = vmax.f32 %v329_v35, 1.0 }
  0xab   : > { %v369_v42 = vrot.slane %v368_v33, 2 }
  0xac   : > { %v282_v41 = vpop.permute.xlu1 %281  ;;  %v1075_v43 = vrot.slane %v1072_v39, 2  ;;  %774 = vrcp.f32 %v1072_v39  ;;  %v1079_v46 = vrot.slane %v1072_v39, 5  ;;  %v406_v55 = vand.u32 2147483648, %v1072_v39 }
  0xad   : > { %v320_v44 = vmul.f32 %v282_v41, %v255_v36  ;;  %v370_v51 = vadd.f32 %v369_v42, %v368_v33  ;;  %v1093_v61 = vrot.slane %v1072_v39, 1  ;;  %v404_v5 = vand.u32 2147483647, %v1072_v39  ;;  %v254_v36 = vld [vmem:[%s1053_s7 + $0x8] sm:$0xff] }
  0xae   : > { %776 = vrcp.f32 %v1075_v43  ;;  %v436_v60 = vand.u32 2147483648, %v1075_v43  ;;  %v434_v63 = vand.u32 2147483647, %v1075_v43  ;;  %vm430_vm1 = vweird.f32 %v1075_v43 }
  0xaf   : > { %v343_v50 = vrot.slane %v320_v44, 4  ;;  %778 = vrcp.f32 %v1079_v46  ;;  %v371_v1 = vrot.slane %v370_v51, 1  ;;  %vm400_vm2 = vweird.f32 %v1072_v39 }
  0xb0   : > { %780 = vrcp.f32 %v1093_v61  ;;  %v1106_v10 = vor.u32 1.1754944e-38, %v406_v55  ;;  %v481_v11 = vand.u32 2147483648, %v1079_v46  ;;  %v437_v13 = vor.u32 1.1754944e-38, %v436_v60 }
  0xb1   : > { %v344_v54 = vadd.f32 %v343_v50, %v320_v44  ;;  %v1112_v17 = vrot.slane %v1072_v39, 3  ;;  %vm1114_vm3 = vcmp.eq.f32.partialorder %v434_v63, 8.507059e+37  ;;  %v1118_v20 = vadd.f32 %v371_v1, %v370_v51 }
  0xb2   : > { %v1085_v57 = vpop.eup %774  ;;  %v479_v24 = vand.u32 2147483647, %v1079_v46  ;;  %v1126_v26 = vrot.slane %v1072_v39, 4  ;;  %vm1130_vm6 = vcmp.eq.f32.partialorder %v404_v5, 8.507059e+37  ;;  %v1134_v30 = vor.u32 1.1754944e-38, %v481_v11 }
  0xb3   : > { %v345_v0 = vrot.slane %v344_v54, 2  ;;  %v396_v2 = vmul.f32 %v1085_v57, %v1072_v39  ;;  %vm401_vm4 = vweird.f32 %v1085_v57  ;;  %vm475_vm7 = vweird.f32 %v1079_v46 }
  0xb4   : > { %v268_v3 = vpop.permute.xlu1 %267  ;;  %v1098_v4 = vpop.eup %776  ;;  %v421_v35 = vand.u32 2147483648, %v1093_v61  ;;  %782 = vrcp.f32 %v1112_v17  ;;  %v419_v44 = vand.u32 2147483647, %v1093_v61  ;;  %vm415_vm9 = vweird.f32 %v1093_v61  ;;  %vm1169_vm11 = vmor %vm400_vm2, %vm401_vm4 }
  0xb5   : > { %v318_v6 = vmul.f32 %v268_v3, %v253_v56  ;;  %v426_v8 = vmul.f32 %v1098_v4, %v1075_v43  ;;  %v397_v9 = vsub.f32 1.0, %v396_v2  ;;  %v1109_v12 = vpop.eup %778  ;;  %v346_v14 = vadd.f32 %v345_v0, %v344_v54 }
  0xb6   : > { %v471_v22 = vmul.f32 %v1109_v12, %v1079_v46  ;;  %vm431_vm5 = vweird.f32 %v1098_v4  ;;  %v1137_v32 = vpop.eup %780  ;;  %v1159_v50 = vrot.slane %v1072_v39, 6  ;;  %vm476_vm10 = vweird.f32 %v1109_v12 }
  0xb7   : > { %v331_v15 = vrot.slane %v318_v6, 4  ;;  %v427_v18 = vsub.f32 1.0, %v426_v8  ;;  %v398_v21 = vmul.f32 %v1085_v57, %v397_v9  ;;  %v347_v33 = vrot.slane %v346_v14, 1  ;;  %vm1152_vm8 = vmor %vm430_vm1, %vm431_vm5  ;;  %v260_v9 = vld [vmem:[%s1053_s7 + $0x38] sm:$0xff]  ;;  %s587_s7 = scalar_lea.sflag [#allocation4], %s1049_s10 }
  0xb8   : > { %v472_v29 = vsub.f32 1.0, %v471_v22  ;;  %v411_v42 = vmul.f32 %v1137_v32, %v1093_v61  ;;  %vm1173_vm12 = vcmp.eq.f32.partialorder %v479_v24, 8.507059e+37  ;;  %v422_v62 = vor.u32 1.1754944e-38, %v421_v35  ;;  %vm1206_vm0 = vmor %vm475_vm7, %vm476_vm10 }
  0xb9   : > { %v332_v23 = vadd.f32 %v331_v15, %v318_v6  ;;  %v428_v27 = vmul.f32 %v1098_v4, %v427_v18  ;;  %v399_v40 = vadd.f32 %v1085_v57, %v398_v21  ;;  %v348_v53 = vadd.f32 %v347_v33, %v346_v14 }
  0xba   : > { %v473_v47 = vmul.f32 %v1109_v12, %v472_v29  ;;  %v412_v43 = vsub.f32 1.0, %v411_v42  ;;  %vm1181_vm13 = vcmp.eq.f32.partialorder %v419_v44, 8.507059e+37  ;;  %v1186_v3 = vrot.slane %v1072_v39, 7 }
  0xbb   : > { %v333_v34 = vrot.slane %v332_v23, 2  ;;  %v429_v38 = vadd.f32 %v1098_v4, %v428_v27  ;;  %v403_v63 = vsel %vm1169_vm11, %v1085_v57, %v399_v40  ;;  %vm445_vm14 = vweird.f32 %v1112_v17 }
  0xbc   : > { %v303_v41 = vpop.permute.xlu1 %302  ;;  %v413_v0 = vmul.f32 %v1137_v32, %v412_v43  ;;  %v474_v6 = vadd.f32 %v1109_v12, %v473_v47  ;;  %vm416_vm15 = vweird.f32 %v1137_v32  ;;  %v408_v39 = vsel %vm1130_vm6, %v1106_v10, %v403_v63 }
  0xbd   : > { %v323_v48 = vmul.f32 %v303_v41, %v258_v31  ;;  %v275_v49 = vpop.permute.xlu0 %274  ;;  %v433_v51 = vsel %vm1152_vm8, %v1098_v4, %v429_v38  ;;  %v334_v55 = vadd.f32 %v333_v34, %v332_v23  ;;  %v783_v4 = vpop.eup %782  ;;  %784 = vrcp.f32 %v1126_v26  ;;  %vm1218_vm1 = vmor %vm415_vm9, %vm416_vm15 }
  0xbe   : > { %v319_v52 = vmul.f32 %v275_v49, %v254_v36  ;;  %v438_v5 = vsel %vm1114_vm3, %v437_v13, %v433_v51  ;;  %v414_v57 = vadd.f32 %v1137_v32, %v413_v0  ;;  %v441_v11 = vmul.f32 %v783_v4, %v1112_v17 }
  0xbf   : > { %v361_v60 = vrot.slane %v323_v48, 4  ;;  %v335_v14 = vrot.slane %v334_v55, 1  ;;  %v449_v13 = vand.u32 2147483647, %v1112_v17  ;;  %v1200_v16 = vmul.f32 %v438_v5, %v348_v53 }
  0xc0   : > { %v337_v2 = vrot.slane %v319_v52, 4  ;;  %v442_v22 = vsub.f32 1.0, %v441_v11  ;;  %v478_v10 = vsel %vm1206_vm0, %v1109_v12, %v474_v6  ;;  %vm544_vm2 = vcmask 1041409  }
  0xc1   : > { %v362_v7 = vadd.f32 %v361_v60, %v323_v48  ;;  %vm446_vm3 = vweird.f32 %v783_v4  ;;  %v418_v25 = vsel %vm1218_vm1, %v1137_v32, %v414_v57  ;;  %v451_v12 = vand.u32 2147483648, %v1112_v17 }
  0xc2   : > { %v338_v8 = vadd.f32 %v337_v2, %v319_v52  ;;  %v443_v28 = vmul.f32 %v783_v4, %v442_v22  ;;  %v336_v29 = vadd.f32 %v335_v14, %v334_v55  ;;  %786 = vrcp.f32 %v1159_v50  ;;  %vm1237_vm4 = vmor %vm445_vm14, %vm446_vm3 }
  0xc3   : > { %v363_v15 = vrot.slane %v362_v7, 2  ;;  %v483_v61 = vsel %vm1173_vm12, %v1134_v30, %v478_v10  ;;  %v464_v36 = vand.u32 2147483647, %v1126_v26  ;;  %v546_v37 = vrot.slane %v1200_v16, 6  ;;  %v785_v41 = vpop.eup %784 }
  0xc4   : > { %v339_v19 = vrot.slane %v338_v8, 2  ;;  %v317_v21 = vpop.permute.xlu1 %316  ;;  %v444_v35 = vadd.f32 %v783_v4, %v443_v28  ;;  %v423_v32 = vsel %vm1181_vm13, %v422_v62, %v418_v25  ;;  %vm450_vm5 = vcmp.eq.f32.partialorder %v449_v13, 8.507059e+37 }
  0xc5   : > { %v364_v23 = vadd.f32 %v363_v15, %v362_v7  ;;  %v325_v24 = vmul.f32 %v317_v21, %v260_v9  ;;  %v452_v44 = vor.u32 1.1754944e-38, %v451_v12  ;;  %788 = vrcp.f32 %v1186_v3 }
  0xc6   : > { %v340_v27 = vadd.f32 %v339_v19, %v338_v8  ;;  %v448_v42 = vsel %vm1237_vm4, %v783_v4, %v444_v35  ;;  %v456_v48 = vmul.f32 %v785_v41, %v1126_v26  ;;  %v466_v49 = vand.u32 2147483648, %v1126_v26 }
  0xc7   : > { %v365_v31 = vrot.slane %v364_v23, 1  ;;  %v373_v33 = vrot.slane %v325_v24, 4  ;;  %v409_v17 = vmul.f32 %v408_v39, %v336_v29  ;;  %vm460_vm6 = vweird.f32 %v1126_v26 }
  0xc8   : > { %v341_v34 = vrot.slane %v340_v27, 1  ;;  %vm1247_vm7 = vcmp.eq.f32.partialorder %v464_v36, 8.507059e+37  ;;  %v787_v52 = vpop.eup %786  ;;  %v453_v53 = vsel %vm450_vm5, %v452_v44, %v448_v42  ;;  %v457_v54 = vsub.f32 1.0, %v456_v48 }
  0xc9   : > { %v374_v38 = vadd.f32 %v373_v33, %v325_v24  ;;  %v366_v45 = vadd.f32 %v365_v31, %v364_v23  ;;  %v494_v55 = vand.u32 2147483647, %v1159_v50  ;;  %v496_v56 = vand.u32 2147483648, %v1159_v50 }
  0xca   : > { %v342_v30 = vadd.f32 %v341_v34, %v340_v27  ;;  %v486_v63 = vmul.f32 %v787_v52, %v1159_v50  ;;  %vm490_vm8 = vweird.f32 %v1159_v50  ;;  %v458_v1 = vmul.f32 %v785_v41, %v457_v54 }
  0xcb   : > { %v375_v47 = vrot.slane %v374_v38, 2  ;;  %v484_v0 = vmul.f32 %v483_v61, %v366_v45  ;;  %vm461_vm9 = vweird.f32 %v785_v41  ;;  %v467_v2 = vor.u32 1.1754944e-38, %v466_v49  ;;  %v789_v4 = vpop.eup %788 }
  0xcc   : > { %v424_v51 = vmul.f32 %v423_v32, %v342_v30  ;;  %v454_v6 = vmul.f32 %v453_v53, %v1087_v58  ;;  %v487_v7 = vsub.f32 1.0, %v486_v63  ;;  %vm547_vm10 = vcmask 1042434   ;;  %vm462_vm12 = vmor %vm460_vm6, %vm461_vm9 }
  0xcd   : > { %v376_v62 = vadd.f32 %v375_v47, %v374_v38  ;;  %v459_v57 = vadd.f32 %v785_v41, %v458_v1  ;;  %vm1257_vm11 = vcmp.eq.f32.partialorder %v494_v55, 8.507059e+37  ;;  %v497_v9 = vor.u32 1.1754944e-38, %v496_v56 }
  0xce   : > { %v543_v60 = vrot.slane %v424_v51, 7  ;;  %v501_v11 = vmul.f32 %v789_v4, %v1186_v3  ;;  %v488_v14 = vmul.f32 %v787_v52, %v487_v7  ;;  %vm491_vm13 = vweird.f32 %v787_v52 }
  0xcf   : > { %v377_v39 = vrot.slane %v376_v62, 1  ;;  %vm505_vm14 = vweird.f32 %v1186_v3  ;;  %v463_v15 = vsel %vm462_vm12, %v785_v41, %v459_v57  ;;  %vm550_vm15 = vcmask 1043459   ;;  %vm492_vm0 = vmor %vm490_vm8, %vm491_vm13 }
  0xd0   : > { %v545_v5 = vsel %vm544_vm2, %v543_v60, %v409_v17  ;;  %v502_v58 = vsub.f32 1.0, %v501_v11  ;;  %v468_v16 = vsel %vm1247_vm7, %v467_v2, %v463_v15  ;;  %v489_v18 = vadd.f32 %v787_v52, %v488_v14 }
  0xd1   : > { %v548_v13 = vsel %vm547_vm10, %v546_v37, %v545_v5  ;;  %v511_v19 = vand.u32 2147483648, %v1186_v3  ;;  %v549_v21 = vrot.slane %v454_v6, 5  ;;  %v469_v22 = vmul.f32 %v468_v16, %v1089_v59 }
  0xd2   : > { %v503_v26 = vmul.f32 %v789_v4, %v502_v58  ;;  %vm506_vm1 = vweird.f32 %v789_v4  ;;  %v509_v10 = vand.u32 2147483647, %v1186_v3  ;;  %v378_v23 = vadd.f32 %v377_v39, %v376_v62 }
  0xd3   : > { %v493_v46 = vsel %vm492_vm0, %v787_v52, %v489_v18  ;;  %v551_v24 = vsel %vm550_vm15, %v549_v21, %v548_v13  ;;  %vm553_vm2 = vcmask 1044484   ;;  %v552_v28 = vrot.slane %v469_v22, 4  ;;  %vm507_vm4 = vmor %vm505_vm14, %vm506_vm1 }
  0xd4   : > { %v498_v25 = vsel %vm1257_vm11, %v497_v9, %v493_v46  ;;  %v504_v27 = vadd.f32 %v789_v4, %v503_v26  ;;  %vm556_vm3 = vcmask 1045509   ;;  %v555_v12 = vrot.slane %v484_v0, 3 }
  0xd5   : > { %v499_v59 = vmul.f32 %v498_v25, %v1118_v20  ;;  %v512_v50 = vor.u32 1.1754944e-38, %v511_v19  ;;  %vm510_vm5 = vcmp.eq.f32.partialorder %v509_v10, 8.507059e+37  ;;  %v554_v31 = vsel %vm553_vm2, %v552_v28, %v551_v24  ;;  %v773_v20 = vld [vmem:[%s1317_s3] ss:$0 sm:$0xff] }
  0xd6   : > { %v508_v29 = vsel %vm507_vm4, %v789_v4, %v504_v27  ;;  %vm559_vm6 = vcmask 1046534   ;;  %v557_v61 = vsel %vm556_vm3, %v555_v12, %v554_v31  ;;  %vm562_vm7 = vcmask 1047559  }
  0xd7   : > { %v513_v33 = vsel %vm510_vm5, %v512_v50, %v508_v29  ;;  %v558_v34 = vrot.slane %v499_v59, 2 }
  0xd8   : > { %v514_v35 = vmul.f32 %v513_v33, %v378_v23 }
  0xd9   : > { %v560_v36 = vsel %vm559_vm6, %v558_v34, %v557_v61 }
  0xda   : > { %v561_v37 = vrot.slane %v514_v35, 1 }
  0xdc   : > { %v563_v32 = vsel %vm562_vm7, %v561_v37, %v560_v36 }
  0xdd   : > { %581 = vmatmul.f32.vlgmr.msra.gmra.mxu0 %v563_v32 }
 0x15a   : > { %v582_v3 = vpop.f32.mrf.mxu0 }
 0x15b   : > { %v583_v38 = vadd.f32 %v773_v20, %v582_v3 }
 0x15d   : > { %585 = vst [vmem:[%s247_s20] sm:$0xff] %v583_v38 }
 0x15e   : > { %877 = shalt.err (!%p874_p12)
}
 0x15f   : > { %717 = dma.vmem_to_hbm [thread:$0]  (%p1019_p3), %s600_s24, 128, %s602_s6, %s587_s7  }
 0x160 PF: > { %s613_s10 = sand.u32 1, %s908_s15   ;;  %p1346_p13 = scmp.ge.s32.totalorder %s920_s18, 2 }
 0x161   : > { %s614_s27 = scalar_lea.sflag [#allocation4], %s613_s10 }
 0x162   : > { %p728_p0 = pnand %p1346_p13, %p985_p6 }
 0x164   : > { %p729_p5 = pneg %p728_p0 }
 0x166   : > { %903 = dma.done.wait (%p729_p5), %s614_s27, 128  }
 0x167   : > { %905 = vsyncadd (%p729_p5), %s614_s27, 4294967168  ;;  %p18_p7 = scmp.ge.s32.totalorder %s1003_s29, 4   ;;  %s1347_s15 = smov %s912_s16 }
 0x168   : > { %s1348_s16 = smov %s916_s17  ;;  %s1349_s17 = smov %s1015_s8 }
 0x169   : > { %s1350_s18 = smov %s1003_s29  ;;  %20 = sbr.rel (!%p18_p7) target bundleno = 6 (0x6), region = 88 }
 0x16e   :  { %620 = vsyncpa [#allocation3], 1 }
 0x16f   :  { %622 = vsyncpa [#allocation3 + $0x1], 1 }
 0x170   :  { %623 = vsyncpa [#allocation6], 1 }
 0x171   :  { %624 = vsyncpa [#allocation4], 1 }
 0x172   :  { %626 = vsyncpa [#allocation4 + $0x1], 1 }

</bundles_post_ra>
